<compile_context>
chip_gen: v5e
topology: v5e:2x2
jax: 0.10.0
libtpu: 0.0.40
codegen_flags: <defaults>
</compile_context>

<pallas_src>
import jax
import jax.numpy as jnp
from jax import lax
from jax.experimental import pallas as pl
from jax.experimental.pallas import tpu as pltpu

INP = 16
OUT1, OUT2, OUT3 = 32, 64, 32
BN_EPS = 1e-5
LANES = 128

# Packed-slab row layout (all weight tiles are full [128, 128], zero-padded).
W1_R0 = 0 * LANES          # w1:    [16, 32]  -> rows   0..127
W2_R0 = 1 * LANES          # w2:    [32, 64]  -> rows 128..255
W3_R0 = 2 * LANES          # w3:    [64, 32]  -> rows 256..383
WE_R0 = 3 * LANES          # w_end: [32,  1]  -> rows 384..511
VEC_R0 = 4 * LANES         # 8 vector rows    -> rows 512..519
(B1_ROW, G2_ROW, BE2_ROW, B2_ROW,
 G3_ROW, BE3_ROW, B3_ROW, BEND_ROW) = range(VEC_R0, VEC_R0 + 8)
P_ROWS = VEC_R0 + 8        # 520 (multiple of 8 -> sublane aligned)


def _mlp_kernel(x_ref, p_ref, o_ref):
    B = x_ref.shape[0]
    inv_b = jnp.float32(1.0 / B)
    x = x_ref[...]                                   # [B, 128], cols 16.. are 0

    # ---- line1 + ReLU (act1): full 128-lane, unmasked tiles -----------------
    h = jnp.dot(x, p_ref[W1_R0:W1_R0 + LANES, :],
                preferred_element_type=jnp.float32) + p_ref[B1_ROW:B1_ROW + 1, :]
    h = jnp.maximum(h, 0.0)

    # ---- bn2: training-mode batch stats, fused single-pass sum/sumsq --------
    # Pad lanes: mu = var = 0 and gamma = beta = 0 -> remain exactly 0.
    s1 = jnp.sum(h, axis=0, keepdims=True)
    s2 = jnp.sum(h * h, axis=0, keepdims=True)
    mu = s1 * inv_b
    var = s2 * inv_b - mu * mu
    h = (h - mu) * lax.rsqrt(var + BN_EPS) * p_ref[G2_ROW:G2_ROW + 1, :] \
        + p_ref[BE2_ROW:BE2_ROW + 1, :]

    # ---- line2 + Tanh (act2) -------------------------------------------------
    h = jnp.tanh(jnp.dot(h, p_ref[W2_R0:W2_R0 + LANES, :],
                         preferred_element_type=jnp.float32)
                 + p_ref[B2_ROW:B2_ROW + 1, :])

    # ---- bn3: fused single-pass batch stats ----------------------------------
    s1 = jnp.sum(h, axis=0, keepdims=True)
    s2 = jnp.sum(h * h, axis=0, keepdims=True)
    mu = s1 * inv_b
    var = s2 * inv_b - mu * mu
    h = (h - mu) * lax.rsqrt(var + BN_EPS) * p_ref[G3_ROW:G3_ROW + 1, :] \
        + p_ref[BE3_ROW:BE3_ROW + 1, :]

    # ---- line3 + Sigmoid (act3, EUP logistic) --------------------------------
    # Pad lanes become sigmoid(0) = 0.5; killed below by w_end's zero pad rows.
    h = jax.nn.sigmoid(jnp.dot(h, p_ref[W3_R0:W3_R0 + LANES, :],
                               preferred_element_type=jnp.float32)
                       + p_ref[B3_ROW:B3_ROW + 1, :])

    # ---- line_end: lane-dense (B, 128) result; only column 0 is real --------
    o_ref[...] = jnp.dot(h, p_ref[WE_R0:WE_R0 + LANES, :],
                         preferred_element_type=jnp.float32) \
        + p_ref[BEND_ROW:BEND_ROW + 1, :]


def _pack_params(p):
    """Pack all 12 parameter tensors into one [520, 128] slab of full-lane tiles."""
    def wtile(w):
        r, c = w.shape
        return jnp.pad(w.astype(jnp.float32), ((0, LANES - r), (0, LANES - c)))

    def vrow(v):
        v = jnp.ravel(v).astype(jnp.float32)
        return jnp.pad(v, (0, LANES - v.shape[0]))[None, :]

    slab = jnp.concatenate(
        [wtile(p["w1"]), wtile(p["w2"]), wtile(p["w3"]), wtile(p["w_end"]),
         vrow(p["b1"]), vrow(p["g2"]), vrow(p["be2"]), vrow(p["b2"]),
         vrow(p["g3"]), vrow(p["be3"]), vrow(p["b3"]), vrow(p["b_end"])],
        axis=0)
    assert slab.shape == (P_ROWS, LANES)
    return slab


def create_model_forward(x, params):
    """x: [B, INP] f32.  params: dict of pre-transposed ([in, out]) weights/biases."""
    B = x.shape[0]
    x_pad = jnp.pad(x.astype(jnp.float32), ((0, 0), (0, LANES - x.shape[1])))
    slab = _pack_params(params)

    out = pl.pallas_call(
        _mlp_kernel,
        out_shape=jax.ShapeDtypeStruct((B, LANES), jnp.float32),
        in_specs=[pl.BlockSpec(memory_space=pltpu.MemorySpace.VMEM),
                  pl.BlockSpec(memory_space=pltpu.MemorySpace.VMEM)],
        out_specs=pl.BlockSpec(memory_space=pltpu.MemorySpace.VMEM),
    )(x_pad, slab)
    return out[:, :1]


def init_params(key):
    """Deterministic init mimicking PyTorch Linear defaults (U[-1/sqrt(fan_in), ..])."""
    ks = jax.random.split(key, 4)

    def linear(k, fan_in, fan_out):
        kw, kb = jax.random.split(k)
        bound = 1.0 / jnp.sqrt(fan_in)
        w = jax.random.uniform(kw, (fan_in, fan_out), jnp.float32, -bound, bound)
        b = jax.random.uniform(kb, (1, fan_out), jnp.float32, -bound, bound)
        return w, b

    w1, b1 = linear(ks[0], INP, OUT1)
    w2, b2 = linear(ks[1], OUT1, OUT2)
    w3, b3 = linear(ks[2], OUT2, OUT3)
    we, bend = linear(ks[3], OUT3, 1)
    return {
        "w1": w1, "b1": b1,
        "g2": jnp.ones((1, OUT1), jnp.float32),    # BatchNorm1d default gamma
        "be2": jnp.zeros((1, OUT1), jnp.float32),  # BatchNorm1d default beta
        "w2": w2, "b2": b2,
        "g3": jnp.ones((1, OUT2), jnp.float32),
        "be3": jnp.zeros((1, OUT2), jnp.float32),
        "w3": w3, "b3": b3,
        "w_end": we, "b_end": bend,
    }


def reference_forward(x, p):
    """Pure-JAX reference matching PyTorch training-mode forward semantics."""
    h = x @ p["w1"] + p["b1"]
    h = jnp.maximum(h, 0.0)
    mu = h.mean(0, keepdims=True)
    var = ((h - mu) ** 2).mean(0, keepdims=True)
    h = (h - mu) / jnp.sqrt(var + BN_EPS) * p["g2"] + p["be2"]
    h = jnp.tanh(h @ p["w2"] + p["b2"])
    mu = h.mean(0, keepdims=True)
    var = ((h - mu) ** 2).mean(0, keepdims=True)
    h = (h - mu) / jnp.sqrt(var + BN_EPS) * p["g3"] + p["be3"]
    h = jax.nn.sigmoid(h @ p["w3"] + p["b3"])
    return h @ p["w_end"] + p["b_end"]


if __name__ == "__main__":
    key = jax.random.PRNGKey(0)
    kx, kp = jax.random.split(key)

    B = 8
    x = jax.random.normal(kx, (B, INP), jnp.float32)
    params = init_params(kp)

    out = create_model_forward(x, params)
    out = jax.block_until_ready(out)

    ref = reference_forward(x, params)
    assert out.shape == (B, 1), out.shape
    assert jnp.allclose(out, ref, atol=1e-3, rtol=1e-3), (
        f"max abs err {jnp.max(jnp.abs(out - ref))}")

    print("KERNEL_OK")
</pallas_src>

<mosaic_0001>
module attributes {stable_mosaic.version = 11 : i64} {
  func.func @_mlp_kernel(%arg0: memref<8x128xf32, #tpu.memory_space<vmem>>, %arg1: memref<520x128xf32, #tpu.memory_space<vmem>>, %arg2: memref<8x128xf32, #tpu.memory_space<vmem>>) attributes {dimension_semantics = [], scalar_prefetch = 0 : i64, scratch_operands = 0 : i64, tpu.core_type = #tpu.core_type<tc>} {
    %c0 = arith.constant 0 : index
    %c0_0 = arith.constant 0 : index
    %0 = vector.load %arg0[%c0, %c0_0] : memref<8x128xf32, #tpu.memory_space<vmem>>, vector<8x128xf32>
    %c0_1 = arith.constant 0 : index
    %c0_2 = arith.constant 0 : index
    %1 = vector.load %arg1[%c0_1, %c0_2] : memref<520x128xf32, #tpu.memory_space<vmem>>, vector<128x128xf32>
    %cst = arith.constant dense<0.000000e+00> : vector<8x128xf32>
    %2 = tpu.matmul %0, %1, %cst {dimension_numbers = #tpu.dot_dimension_numbers<[1], [0], [0], [1], [0, 0, 1, 1], [], []>} : vector<8x128xf32>, vector<128x128xf32>, vector<8x128xf32> -> vector<8x128xf32>
    %c512 = arith.constant 512 : index
    %c0_3 = arith.constant 0 : index
    %3 = vector.load %arg1[%c512, %c0_3] : memref<520x128xf32, #tpu.memory_space<vmem>>, vector<1x128xf32>
    %4 = vector.broadcast %3 : vector<1x128xf32> to vector<8x128xf32>
    %5 = arith.addf %2, %4 : vector<8x128xf32>
    %cst_4 = arith.constant 0.000000e+00 : f32
    %6 = vector.broadcast %cst_4 : f32 to vector<8x128xf32>
    %7 = arith.maximumf %5, %6 : vector<8x128xf32>
    %cst_5 = arith.constant dense<0.000000e+00> : vector<128xf32>
    %8 = vector.multi_reduction <add>, %7, %cst_5 [0] : vector<8x128xf32> to vector<128xf32>
    %9 = vector.shape_cast %8 : vector<128xf32> to vector<1x128xf32>
    %10 = arith.mulf %7, %7 : vector<8x128xf32>
    %cst_6 = arith.constant dense<0.000000e+00> : vector<128xf32>
    %11 = vector.multi_reduction <add>, %10, %cst_6 [0] : vector<8x128xf32> to vector<128xf32>
    %12 = vector.shape_cast %11 : vector<128xf32> to vector<1x128xf32>
    %cst_7 = arith.constant 1.250000e-01 : f32
    %13 = vector.broadcast %cst_7 : f32 to vector<1x128xf32>
    %14 = arith.mulf %9, %13 : vector<1x128xf32>
    %cst_8 = arith.constant 1.250000e-01 : f32
    %15 = vector.broadcast %cst_8 : f32 to vector<1x128xf32>
    %16 = arith.mulf %12, %15 : vector<1x128xf32>
    %17 = arith.mulf %14, %14 : vector<1x128xf32>
    %18 = arith.subf %16, %17 : vector<1x128xf32>
    %19 = vector.broadcast %14 : vector<1x128xf32> to vector<8x128xf32>
    %20 = arith.subf %7, %19 : vector<8x128xf32>
    %cst_9 = arith.constant 9.99999974E-6 : f32
    %21 = vector.broadcast %cst_9 : f32 to vector<1x128xf32>
    %22 = arith.addf %18, %21 : vector<1x128xf32>
    %23 = math.rsqrt %22 : vector<1x128xf32>
    %24 = vector.broadcast %23 : vector<1x128xf32> to vector<8x128xf32>
    %25 = arith.mulf %20, %24 : vector<8x128xf32>
    %c513 = arith.constant 513 : index
    %c0_10 = arith.constant 0 : index
    %26 = vector.load %arg1[%c513, %c0_10] : memref<520x128xf32, #tpu.memory_space<vmem>>, vector<1x128xf32>
    %27 = vector.broadcast %26 : vector<1x128xf32> to vector<8x128xf32>
    %28 = arith.mulf %25, %27 : vector<8x128xf32>
    %c514 = arith.constant 514 : index
    %c0_11 = arith.constant 0 : index
    %29 = vector.load %arg1[%c514, %c0_11] : memref<520x128xf32, #tpu.memory_space<vmem>>, vector<1x128xf32>
    %30 = vector.broadcast %29 : vector<1x128xf32> to vector<8x128xf32>
    %31 = arith.addf %28, %30 : vector<8x128xf32>
    %c128 = arith.constant 128 : index
    %c0_12 = arith.constant 0 : index
    %32 = vector.load %arg1[%c128, %c0_12] : memref<520x128xf32, #tpu.memory_space<vmem>>, vector<128x128xf32>
    %cst_13 = arith.constant dense<0.000000e+00> : vector<8x128xf32>
    %33 = tpu.matmul %31, %32, %cst_13 {dimension_numbers = #tpu.dot_dimension_numbers<[1], [0], [0], [1], [0, 0, 1, 1], [], []>} : vector<8x128xf32>, vector<128x128xf32>, vector<8x128xf32> -> vector<8x128xf32>
    %c515 = arith.constant 515 : index
    %c0_14 = arith.constant 0 : index
    %34 = vector.load %arg1[%c515, %c0_14] : memref<520x128xf32, #tpu.memory_space<vmem>>, vector<1x128xf32>
    %35 = vector.broadcast %34 : vector<1x128xf32> to vector<8x128xf32>
    %36 = arith.addf %33, %35 : vector<8x128xf32>
    %37 = math.tanh %36 : vector<8x128xf32>
    %cst_15 = arith.constant dense<0.000000e+00> : vector<128xf32>
    %38 = vector.multi_reduction <add>, %37, %cst_15 [0] : vector<8x128xf32> to vector<128xf32>
    %39 = vector.shape_cast %38 : vector<128xf32> to vector<1x128xf32>
    %40 = arith.mulf %37, %37 : vector<8x128xf32>
    %cst_16 = arith.constant dense<0.000000e+00> : vector<128xf32>
    %41 = vector.multi_reduction <add>, %40, %cst_16 [0] : vector<8x128xf32> to vector<128xf32>
    %42 = vector.shape_cast %41 : vector<128xf32> to vector<1x128xf32>
    %cst_17 = arith.constant 1.250000e-01 : f32
    %43 = vector.broadcast %cst_17 : f32 to vector<1x128xf32>
    %44 = arith.mulf %39, %43 : vector<1x128xf32>
    %cst_18 = arith.constant 1.250000e-01 : f32
    %45 = vector.broadcast %cst_18 : f32 to vector<1x128xf32>
    %46 = arith.mulf %42, %45 : vector<1x128xf32>
    %47 = arith.mulf %44, %44 : vector<1x128xf32>
    %48 = arith.subf %46, %47 : vector<1x128xf32>
    %49 = vector.broadcast %44 : vector<1x128xf32> to vector<8x128xf32>
    %50 = arith.subf %37, %49 : vector<8x128xf32>
    %cst_19 = arith.constant 9.99999974E-6 : f32
    %51 = vector.broadcast %cst_19 : f32 to vector<1x128xf32>
    %52 = arith.addf %48, %51 : vector<1x128xf32>
    %53 = math.rsqrt %52 : vector<1x128xf32>
    %54 = vector.broadcast %53 : vector<1x128xf32> to vector<8x128xf32>
    %55 = arith.mulf %50, %54 : vector<8x128xf32>
    %c516 = arith.constant 516 : index
    %c0_20 = arith.constant 0 : index
    %56 = vector.load %arg1[%c516, %c0_20] : memref<520x128xf32, #tpu.memory_space<vmem>>, vector<1x128xf32>
    %57 = vector.broadcast %56 : vector<1x128xf32> to vector<8x128xf32>
    %58 = arith.mulf %55, %57 : vector<8x128xf32>
    %c517 = arith.constant 517 : index
    %c0_21 = arith.constant 0 : index
    %59 = vector.load %arg1[%c517, %c0_21] : memref<520x128xf32, #tpu.memory_space<vmem>>, vector<1x128xf32>
    %60 = vector.broadcast %59 : vector<1x128xf32> to vector<8x128xf32>
    %61 = arith.addf %58, %60 : vector<8x128xf32>
    %c256 = arith.constant 256 : index
    %c0_22 = arith.constant 0 : index
    %62 = vector.load %arg1[%c256, %c0_22] : memref<520x128xf32, #tpu.memory_space<vmem>>, vector<128x128xf32>
    %cst_23 = arith.constant dense<0.000000e+00> : vector<8x128xf32>
    %63 = tpu.matmul %61, %62, %cst_23 {dimension_numbers = #tpu.dot_dimension_numbers<[1], [0], [0], [1], [0, 0, 1, 1], [], []>} : vector<8x128xf32>, vector<128x128xf32>, vector<8x128xf32> -> vector<8x128xf32>
    %c518 = arith.constant 518 : index
    %c0_24 = arith.constant 0 : index
    %64 = vector.load %arg1[%c518, %c0_24] : memref<520x128xf32, #tpu.memory_space<vmem>>, vector<1x128xf32>
    %65 = vector.broadcast %64 : vector<1x128xf32> to vector<8x128xf32>
    %66 = arith.addf %63, %65 : vector<8x128xf32>
    %67 = arith.negf %66 : vector<8x128xf32>
    %68 = math.exp %67 : vector<8x128xf32>
    %cst_25 = arith.constant 1.000000e+00 : f32
    %69 = vector.broadcast %cst_25 : f32 to vector<8x128xf32>
    %70 = arith.addf %69, %68 : vector<8x128xf32>
    %71 = arith.divf %69, %70 : vector<8x128xf32>
    %c384 = arith.constant 384 : index
    %c0_26 = arith.constant 0 : index
    %72 = vector.load %arg1[%c384, %c0_26] : memref<520x128xf32, #tpu.memory_space<vmem>>, vector<128x128xf32>
    %cst_27 = arith.constant dense<0.000000e+00> : vector<8x128xf32>
    %73 = tpu.matmul %71, %72, %cst_27 {dimension_numbers = #tpu.dot_dimension_numbers<[1], [0], [0], [1], [0, 0, 1, 1], [], []>} : vector<8x128xf32>, vector<128x128xf32>, vector<8x128xf32> -> vector<8x128xf32>
    %c519 = arith.constant 519 : index
    %c0_28 = arith.constant 0 : index
    %74 = vector.load %arg1[%c519, %c0_28] : memref<520x128xf32, #tpu.memory_space<vmem>>, vector<1x128xf32>
    %75 = vector.broadcast %74 : vector<1x128xf32> to vector<8x128xf32>
    %76 = arith.addf %73, %75 : vector<8x128xf32>
    %c0_29 = arith.constant 0 : index
    %c0_30 = arith.constant 0 : index
    %77 = vector.load %arg2[%c0_29, %c0_30] : memref<8x128xf32, #tpu.memory_space<vmem>>, vector<8x128xf32>
    tpu.vector_store %arg2[%c0_29, %c0_30], %76 {strides = array<i32>} : memref<8x128xf32, #tpu.memory_space<vmem>>, vector<8x128xf32>,
    return
  }
}

</mosaic_0001>

<bundles_post_ra>
// kernel: tpu_custom_call.1
= control target key start
LH: loop header
LB: loop body
LE: loop exit
PB: predicated region body
PF: predicated region fallthrough
CT: control target
= control target key end

     0   :  { %7 = vsyncpa [#allocation3], 0  ;;  %s438_s0 = inlined_call_operand.hbm [shape: f32[8,128], index: 0, kind: input, shape index: {}]   ;;  %s439_s1 = inlined_call_operand.hbm [shape: f32[520,128], index: 1, kind: input, shape index: {}]   ;;  %s440_s2 = inlined_call_operand.hbm [shape: f32[8,128], index: 2, kind: output, shape index: {}]  }
   0x1   :  { %8 = vsyncpa [#allocation6], 0 }
   0x2   :  { %9 = vsyncpa [#allocation4], 0  ;;  %s15_s11 = sshll.u32 %s438_s0, 4  ;;  %s409_s12 = smov [#allocation2]   ;;  %s16_s11 = int_to_ptr.hbm [resolvable:$true] %s15_s11 }
   0x3   :  { %s17_s13 = sshll.u32 %s409_s12, 4  ;;  %s25_s16 = sshll.u32 %s439_s1, 4  ;;  %s18_s13 = int_to_ptr.vmem [resolvable:$true] %s17_s13  ;;  %s26_s16 = int_to_ptr.hbm [resolvable:$true] %s25_s16 }
   0x4   :  { %20 = dma.hbm_to_vmem [thread:$0]  %s16_s11, 128, %s18_s13, [#allocation3]  }
   0x5   :  { %s410_s17 = smov [#allocation5]   ;;  %s411_s19 = smov 128  }
   0x6   :  { %s27_s18 = sshll.u32 %s410_s17, 4  ;;  %s412_s20 = smov 8   ;;  %s28_s18 = int_to_ptr.vmem [resolvable:$true] %s27_s18 }
   0x7   :  { %33 = dma.hbm_to_vmem [thread:$0]  %s26_s16, 8320, %s28_s18, [#allocation6], %s411_s19, %s411_s19, %s412_s20  }
   0x8   :  { %403 = dma.done.wait [#allocation3], 128  }
   0x9   :  { %404 = vsyncadd [#allocation3], 4294967168 }
   0xa   :  { %405 = dma.done.wait [#allocation6], 8320  }
   0xb   :  { %406 = vsyncadd [#allocation6], 4294958976  ;;  %v58_v0 = vld [vmem:[#allocation5 + $0x78] sm:$0xff]  ;;  %v57_v1 = vld [vmem:[#allocation5 + $0x70] sm:$0xff]  ;;  %s413_s0 = smov [#allocation7]   ;;  %s296_s23 = sshll.u32 %s440_s2, 4  ;;  %s297_s23 = int_to_ptr.hbm [resolvable:$true] %s296_s23 }
   0xc   :  { %61 = vmatpush.msra.mxu0 %v58_v0  ;;  %v56_v2 = vld [vmem:[#allocation5 + $0x68] sm:$0xff]  ;;  %v55_v3 = vld [vmem:[#allocation5 + $0x60] sm:$0xff]  ;;  %v54_v4 = vld [vmem:[#allocation5 + $0x58] sm:$0xff]  ;;  %s294_s1 = sshll.u32 %s413_s0, 4  ;;  %s295_s1 = int_to_ptr.vmem [resolvable:$true] %s294_s1 }
   0xd   :  { %v53_v5 = vld [vmem:[#allocation5 + $0x50] sm:$0xff]  ;;  %v52_v6 = vld [vmem:[#allocation5 + $0x48] sm:$0xff]  ;;  %v51_v7 = vld [vmem:[#allocation5 + $0x40] sm:$0xff] }
   0xe   :  { %62 = vmatpush.msra.mxu0 %v57_v1  ;;  %v50_v8 = vld [vmem:[#allocation5 + $0x38] sm:$0xff]  ;;  %v49_v9 = vld [vmem:[#allocation5 + $0x30] sm:$0xff]  ;;  %v48_v10 = vld [vmem:[#allocation5 + $0x28] sm:$0xff] }
   0xf   :  { %v47_v11 = vld [vmem:[#allocation5 + $0x20] sm:$0xff]  ;;  %v46_v12 = vld [vmem:[#allocation5 + $0x18] sm:$0xff]  ;;  %v45_v13 = vld [vmem:[#allocation5 + $0x10] sm:$0xff] }
  0x10   :  { %63 = vmatpush.msra.mxu0 %v56_v2  ;;  %v44_v14 = vld [vmem:[#allocation5 + $0x8] sm:$0xff]  ;;  %v43_v15 = vld [vmem:[#allocation5] sm:$0xff]  ;;  %v42_v16 = vld [vmem:[#allocation2] sm:$0xff] }
  0x11   :  { %v133_v17 = vld [vmem:[#allocation5 + $0xf8] sm:$0xff]  ;;  %v132_v18 = vld [vmem:[#allocation5 + $0xf0] sm:$0xff]  ;;  %v131_v19 = vld [vmem:[#allocation5 + $0xe8] sm:$0xff] }
  0x12   :  { %64 = vmatpush.msra.mxu0 %v55_v3  ;;  %136 = vmatpush.msra.mxu1 %v133_v17  ;;  %v130_v20 = vld [vmem:[#allocation5 + $0xe0] sm:$0xff]  ;;  %v129_v21 = vld [vmem:[#allocation5 + $0xd8] sm:$0xff]  ;;  %v128_v22 = vld [vmem:[#allocation5 + $0xd0] sm:$0xff] }
  0x13   :  { %v127_v23 = vld [vmem:[#allocation5 + $0xc8] sm:$0xff]  ;;  %v313_v24 = vld [vmem:[#allocation5 + $0x200] ss:$0 sm:$0xff]  ;;  %v125_v26 = vld [vmem:[#allocation5 + $0xb8] sm:$0xff] }
  0x14   :  { %65 = vmatpush.msra.mxu0 %v54_v4  ;;  %137 = vmatpush.msra.mxu1 %v132_v18  ;;  %v126_v25 = vld [vmem:[#allocation5 + $0xc0] sm:$0xff]  ;;  %v124_v29 = vld [vmem:[#allocation5 + $0xb0] sm:$0xff]  ;;  %v123_v31 = vld [vmem:[#allocation5 + $0xa8] sm:$0xff] }
  0x15   :  { %v122_v34 = vld [vmem:[#allocation5 + $0xa0] sm:$0xff]  ;;  %v121_v37 = vld [vmem:[#allocation5 + $0x98] sm:$0xff]  ;;  %v120_v40 = vld [vmem:[#allocation5 + $0x90] sm:$0xff] }
  0x16   :  { %66 = vmatpush.msra.mxu0 %v53_v5  ;;  %138 = vmatpush.msra.mxu1 %v131_v19  ;;  %v119_v43 = vld [vmem:[#allocation5 + $0x88] sm:$0xff]  ;;  %v118_v45 = vld [vmem:[#allocation5 + $0x80] sm:$0xff]  ;;  %v208_v4 = vld [vmem:[#allocation5 + $0x178] sm:$0xff] }
  0x17   :  { %v314_v62 = vld [vmem:[#allocation5 + $0x201] ss:$0 sm:$0xff]  ;;  %v315_v1 = vld [vmem:[#allocation5 + $0x202] ss:$0 sm:$0xff]  ;;  %v207_v5 = vld [vmem:[#allocation5 + $0x170] sm:$0xff]  ;;  %211 = vmatpush.msra.mxu2 %v208_v4 }
  0x18   :  { %67 = vmatpush.msra.mxu0 %v52_v6  ;;  %139 = vmatpush.msra.mxu1 %v130_v20  ;;  %v206_v6 = vld [vmem:[#allocation5 + $0x168] sm:$0xff]  ;;  %v195_v17 = vld [vmem:[#allocation5 + $0x110] sm:$0xff]  ;;  %v316_v18 = vld [vmem:[#allocation5 + $0x203] ss:$0 sm:$0xff] }
  0x19   :  { %212 = vmatpush.msra.mxu2 %v207_v5  ;;  %v194_v19 = vld [vmem:[#allocation5 + $0x108] sm:$0xff]  ;;  %v193_v20 = vld [vmem:[#allocation5 + $0x100] sm:$0xff]  ;;  %v252_v4 = vld [vmem:[#allocation5 + $0x190] sm:$0xff] }
  0x1a   :  { %68 = vmatpush.msra.mxu0 %v51_v7  ;;  %140 = vmatpush.msra.mxu1 %v129_v21  ;;  %v205_v7 = vld [vmem:[#allocation5 + $0x160] sm:$0xff]  ;;  %v251_v5 = vld [vmem:[#allocation5 + $0x188] sm:$0xff] }
  0x1b   :  { %213 = vmatpush.msra.mxu2 %v206_v6  ;;  %v250_v6 = vld [vmem:[#allocation5 + $0x180] sm:$0xff] }
  0x1c   :  { %69 = vmatpush.msra.mxu0 %v50_v8  ;;  %141 = vmatpush.msra.mxu1 %v128_v22  ;;  %v204_v8 = vld [vmem:[#allocation5 + $0x158] sm:$0xff] }
  0x1d   :  { %214 = vmatpush.msra.mxu2 %v205_v7  ;;  %v319_v7 = vld [vmem:[#allocation5 + $0x206] ss:$0 sm:$0xff] }
  0x1e   :  { %70 = vmatpush.msra.mxu0 %v49_v9  ;;  %142 = vmatpush.msra.mxu1 %v127_v23  ;;  %v203_v9 = vld [vmem:[#allocation5 + $0x150] sm:$0xff] }
  0x1f   :  { %215 = vmatpush.msra.mxu2 %v204_v8 }
  0x20   :  { %71 = vmatpush.msra.mxu0 %v48_v10  ;;  %143 = vmatpush.msra.mxu1 %v126_v25  ;;  %v202_v10 = vld [vmem:[#allocation5 + $0x148] sm:$0xff] }
  0x21   :  { %216 = vmatpush.msra.mxu2 %v203_v9 }
  0x22   :  { %72 = vmatpush.msra.mxu0 %v47_v11  ;;  %144 = vmatpush.msra.mxu1 %v125_v26  ;;  %v201_v11 = vld [vmem:[#allocation5 + $0x140] sm:$0xff] }
  0x23   :  { %217 = vmatpush.msra.mxu2 %v202_v10 }
  0x24   :  { %73 = vmatpush.msra.mxu0 %v46_v12  ;;  %145 = vmatpush.msra.mxu1 %v124_v29  ;;  %v200_v12 = vld [vmem:[#allocation5 + $0x138] sm:$0xff] }
  0x25   :  { %218 = vmatpush.msra.mxu2 %v201_v11 }
  0x26   :  { %74 = vmatpush.msra.mxu0 %v45_v13  ;;  %146 = vmatpush.msra.mxu1 %v123_v31  ;;  %v199_v13 = vld [vmem:[#allocation5 + $0x130] sm:$0xff] }
  0x27   :  { %219 = vmatpush.msra.mxu2 %v200_v12 }
  0x28   :  { %75 = vmatpush.msra.mxu0 %v44_v14  ;;  %147 = vmatpush.msra.mxu1 %v122_v34  ;;  %v198_v14 = vld [vmem:[#allocation5 + $0x128] sm:$0xff] }
  0x29   :  { %220 = vmatpush.msra.mxu2 %v199_v13 }
  0x2a   :  { %76 = vmatpush.msra.mxu0 %v43_v15  ;;  %148 = vmatpush.msra.mxu1 %v121_v37  ;;  %v197_v15 = vld [vmem:[#allocation5 + $0x120] sm:$0xff] }
  0x2b   :  { %77 = vmatmul.f32.vlgmr.msra.gmra.mxu0 %v42_v16  ;;  %221 = vmatpush.msra.mxu2 %v198_v14  ;;  %v196_v16 = vld [vmem:[#allocation5 + $0x118] sm:$0xff] }
  0x2c   :  { %149 = vmatpush.msra.mxu1 %v120_v40 }
  0x2d   :  { %222 = vmatpush.msra.mxu2 %v197_v15 }
  0x2e   :  { %150 = vmatpush.msra.mxu1 %v119_v43 }
  0x2f   :  { %223 = vmatpush.msra.mxu2 %v196_v16 }
  0x30   :  { %151 = vmatpush.msra.mxu1 %v118_v45 }
  0x31   :  { %224 = vmatpush.msra.mxu2 %v195_v17 }
  0x33   :  { %225 = vmatpush.msra.mxu2 %v194_v19 }
  0x35   :  { %226 = vmatpush.msra.mxu2 %v193_v20 }
  0xa8   :  { %v78_v27 = vpop.f32.mrf.mxu0 }
  0xa9   :  { %v79_v28 = vadd.f32 %v313_v24, %v78_v27 }
  0xab   :  { %v81_v30 = vmax.f32 %v79_v28, 0.0 }
  0xad   :  { %v82_v32 = vrot.slane %v81_v30, 4  ;;  %v88_v33 = vmul.f32 %v81_v30, %v81_v30 }
  0xaf   :  { %v83_v35 = vadd.f32 %v82_v32, %v81_v30  ;;  %v89_v36 = vrot.slane %v88_v33, 4 }
  0xb1   :  { %v84_v38 = vrot.slane %v83_v35, 2  ;;  %v90_v39 = vadd.f32 %v89_v36, %v88_v33 }
  0xb3   :  { %v85_v41 = vadd.f32 %v84_v38, %v83_v35  ;;  %v91_v42 = vrot.slane %v90_v39, 2 }
  0xb5   :  { %v92_v44 = vadd.f32 %v91_v42, %v90_v39  ;;  %v86_v46 = vrot.slane %v85_v41, 1 }
  0xb7   :  { %v93_v47 = vrot.slane %v92_v44, 1  ;;  %v87_v48 = vadd.f32 %v86_v46, %v85_v41 }
  0xb9   :  { %v94_v49 = vadd.f32 %v93_v47, %v92_v44  ;;  %v95_v50 = vmul.f32 0.125, %v87_v48 }
  0xbb   :  { %v96_v51 = vmul.f32 0.125, %v94_v49  ;;  %v97_v52 = vmul.f32 %v95_v50, %v95_v50  ;;  %v99_v61 = vsub.f32 %v81_v30, %v95_v50  ;;  %v317_v49 = vld [vmem:[#allocation5 + $0x204] ss:$0 sm:$0xff] }
  0xbd   :  { %v98_v53 = vsub.f32 %v96_v51, %v97_v52  ;;  %v318_v52 = vld [vmem:[#allocation5 + $0x205] ss:$0 sm:$0xff] }
  0xbf   :  { %v100_v54 = vadd.f32 1e-05, %v98_v53 }
  0xc1   :  { %321 = vrsqrt.f32 %v100_v54  ;;  %vm107_vm1 = vweird.f32 %v100_v54 }
  0xc7   :  { %v322_v55 = vpop.eup %321 }
  0xc8   :  { %v102_v56 = vmul.f32 %v322_v55, %v100_v54  ;;  %vm108_vm0 = vweird.f32 %v322_v55 }
  0xc9   :  { %vm109_vm2 = vmor %vm107_vm1, %vm108_vm0 }
  0xca   :  { %v103_v57 = vmul.f32 %v322_v55, %v102_v56  ;;  %v264_v56 = vld [vmem:[#allocation5 + $0x1f0] sm:$0xff] }
  0xcc   :  { %v104_v58 = vmul.f32 0.5, %v103_v57  ;;  %v263_v57 = vld [vmem:[#allocation5 + $0x1e8] sm:$0xff] }
  0xce   :  { %v105_v59 = vsub.f32 1.5, %v104_v58  ;;  %v262_v58 = vld [vmem:[#allocation5 + $0x1e0] sm:$0xff] }
  0xd0   :  { %v106_v60 = vmul.f32 %v322_v55, %v105_v59  ;;  %v261_v59 = vld [vmem:[#allocation5 + $0x1d8] sm:$0xff] }
  0xd2   :  { %v110_v63 = vsel %vm109_vm2, %v322_v55, %v106_v60  ;;  %v265_v55 = vld [vmem:[#allocation5 + $0x1f8] sm:$0xff]  ;;  %v260_v60 = vld [vmem:[#allocation5 + $0x1d0] sm:$0xff] }
  0xd3   :  { %v111_v0 = vmul.f32 %v110_v63, %v99_v61  ;;  %268 = vmatpush.msra.mxu3 %v265_v55  ;;  %v259_v61 = vld [vmem:[#allocation5 + $0x1c8] sm:$0xff]  ;;  %v257_v63 = vld [vmem:[#allocation5 + $0x1b8] sm:$0xff] }
  0xd5   :  { %v114_v2 = vmul.f32 %v314_v62, %v111_v0  ;;  %269 = vmatpush.msra.mxu3 %v264_v56  ;;  %v258_v62 = vld [vmem:[#allocation5 + $0x1c0] sm:$0xff]  ;;  %v256_v0 = vld [vmem:[#allocation5 + $0x1b0] sm:$0xff] }
  0xd7   :  { %v117_v3 = vadd.f32 %v315_v1, %v114_v2  ;;  %270 = vmatpush.msra.mxu3 %v263_v57  ;;  %v255_v1 = vld [vmem:[#allocation5 + $0x1a8] sm:$0xff]  ;;  %v254_v2 = vld [vmem:[#allocation5 + $0x1a0] sm:$0xff] }
  0xd9   :  { %152 = vmatmul.f32.vlgmr.msra.gmra.mxu1 %v117_v3  ;;  %271 = vmatpush.msra.mxu3 %v262_v58  ;;  %v253_v3 = vld [vmem:[#allocation5 + $0x198] sm:$0xff] }
  0xdb   :  { %272 = vmatpush.msra.mxu3 %v261_v59 }
  0xdd   :  { %273 = vmatpush.msra.mxu3 %v260_v60 }
  0xdf   :  { %274 = vmatpush.msra.mxu3 %v259_v61 }
  0xe1   :  { %275 = vmatpush.msra.mxu3 %v258_v62 }
  0xe3   :  { %276 = vmatpush.msra.mxu3 %v257_v63 }
  0xe5   :  { %277 = vmatpush.msra.mxu3 %v256_v0 }
  0xe7   :  { %278 = vmatpush.msra.mxu3 %v255_v1 }
  0xe9   :  { %279 = vmatpush.msra.mxu3 %v254_v2 }
  0xeb   :  { %280 = vmatpush.msra.mxu3 %v253_v3 }
  0xed   :  { %281 = vmatpush.msra.mxu3 %v252_v4 }
  0xef   :  { %282 = vmatpush.msra.mxu3 %v251_v5 }
  0xf1   :  { %283 = vmatpush.msra.mxu3 %v250_v6 }
 0x156   :  { %v153_v21 = vpop.f32.mrf.mxu1 }
 0x157   :  { %v154_v22 = vadd.f32 %v316_v18, %v153_v21 }
 0x159   :  { %323 = vtanh.f32 %v154_v22 }
 0x15f   :  { %v324_v23 = vpop.eup %323 }
 0x160   :  { %v157_v24 = vrot.slane %v324_v23, 4  ;;  %v163_v25 = vmul.f32 %v324_v23, %v324_v23 }
 0x162   :  { %v158_v26 = vadd.f32 %v324_v23, %v157_v24  ;;  %v164_v27 = vrot.slane %v163_v25, 4 }
 0x164   :  { %v159_v28 = vrot.slane %v158_v26, 2  ;;  %v165_v29 = vadd.f32 %v164_v27, %v163_v25 }
 0x166   :  { %v160_v30 = vadd.f32 %v159_v28, %v158_v26  ;;  %v166_v31 = vrot.slane %v165_v29, 2 }
 0x168   :  { %v161_v32 = vrot.slane %v160_v30, 1  ;;  %v167_v33 = vadd.f32 %v166_v31, %v165_v29 }
 0x16a   :  { %v162_v34 = vadd.f32 %v161_v32, %v160_v30  ;;  %v168_v35 = vrot.slane %v167_v33, 1 }
 0x16c   :  { %v169_v36 = vadd.f32 %v168_v35, %v167_v33  ;;  %v170_v37 = vmul.f32 0.125, %v162_v34 }
 0x16e   :  { %v171_v38 = vmul.f32 0.125, %v169_v36  ;;  %v172_v39 = vmul.f32 %v170_v37, %v170_v37  ;;  %v174_v48 = vsub.f32 %v324_v23, %v170_v37  ;;  %v320_v23 = vld [vmem:[#allocation5 + $0x207] ss:$0 sm:$0xff] }
 0x170   :  { %v173_v40 = vsub.f32 %v171_v38, %v172_v39 }
 0x172   :  { %v175_v41 = vadd.f32 1e-05, %v173_v40 }
 0x174   :  { %325 = vrsqrt.f32 %v175_v41  ;;  %vm182_vm4 = vweird.f32 %v175_v41 }
 0x17a   :  { %v326_v42 = vpop.eup %325 }
 0x17b   :  { %v177_v43 = vmul.f32 %v326_v42, %v175_v41  ;;  %vm183_vm3 = vweird.f32 %v326_v42 }
 0x17c   :  { %vm184_vm5 = vmor %vm182_vm4, %vm183_vm3 }
 0x17d   :  { %v178_v44 = vmul.f32 %v326_v42, %v177_v43 }
 0x17f   :  { %v179_v45 = vmul.f32 0.5, %v178_v44 }
 0x181   :  { %v180_v46 = vsub.f32 1.5, %v179_v45 }
 0x183   :  { %v181_v47 = vmul.f32 %v326_v42, %v180_v46 }
 0x185   :  { %v185_v50 = vsel %vm184_vm5, %v326_v42, %v181_v47 }
 0x186   :  { %v186_v51 = vmul.f32 %v185_v50, %v174_v48 }
 0x188   :  { %v189_v53 = vmul.f32 %v317_v49, %v186_v51 }
 0x18a   :  { %v192_v54 = vadd.f32 %v318_v52, %v189_v53 }
 0x18c   :  { %227 = vmatmul.f32.vlgmr.msra.gmra.mxu2 %v192_v54 }
 0x20f   :  { %v228_v8 = vpop.f32.mrf.mxu2 }
 0x210   :  { %v229_v9 = vadd.f32 %v319_v7, %v228_v8 }
 0x212   :  { %v307_v10 = vmul.f32 -1.442695, %v229_v9 }
 0x214   :  { %327 = vpow2.f32 %v307_v10 }
 0x21a   :  { %v328_v11 = vpop.eup %327 }
 0x21b   :  { %v234_v12 = vadd.f32 1.0, %v328_v11 }
 0x21d   :  { %329 = vrcp.f32 %v234_v12  ;;  %v246_v16 = vand.u32 2147483648, %v234_v12  ;;  %v244_v18 = vand.u32 2147483647, %v234_v12  ;;  %vm240_vm7 = vweird.f32 %v234_v12 }
 0x21f   :  { %v247_v20 = vor.u32 1.1754944e-38, %v246_v16  ;;  %vm245_vm9 = vcmp.eq.f32.partialorder %v244_v18, 8.507059e+37 }
 0x223   :  { %v330_v13 = vpop.eup %329 }
 0x224   :  { %v236_v14 = vmul.f32 %v330_v13, %v234_v12  ;;  %vm241_vm6 = vweird.f32 %v330_v13 }
 0x225   :  { %vm242_vm8 = vmor %vm240_vm7, %vm241_vm6 }
 0x226   :  { %v237_v15 = vsub.f32 1.0, %v236_v14 }
 0x228   :  { %v238_v17 = vmul.f32 %v330_v13, %v237_v15 }
 0x22a   :  { %v239_v19 = vadd.f32 %v330_v13, %v238_v17 }
 0x22c   :  { %v243_v21 = vsel %vm242_vm8, %v330_v13, %v239_v19 }
 0x22d   :  { %v248_v22 = vsel %vm245_vm9, %v247_v20, %v243_v21 }
 0x22e   :  { %284 = vmatmul.f32.vlgmr.msra.gmra.mxu3 %v248_v22 }
 0x2b1   :  { %v285_v24 = vpop.f32.mrf.mxu3 }
 0x2b2   :  { %v286_v25 = vadd.f32 %v320_v23, %v285_v24 }
 0x2b4   :  { %288 = vst [vmem:[#allocation7] sm:$0xff] %v286_v25 }
 0x2b5   :  { %299 = dma.vmem_to_hbm [thread:$0]  %s295_s1, 128, %s297_s23, [#allocation4]  }
 0x2b6   :  { %407 = dma.done.wait [#allocation4], 128  }
 0x2b7   :  { %408 = vsyncadd [#allocation4], 4294967168 }
 0x2b8   :  { %304 = vsyncpa [#allocation3], 1 }
 0x2b9   :  { %305 = vsyncpa [#allocation6], 1 }
 0x2ba   :  { %306 = vsyncpa [#allocation4], 1 }

</bundles_post_ra>
